<compile_context>
chip_gen: v6e
topology: v6e:2x2x1
jax: 0.10.0
libtpu: 0.0.40
codegen_flags: <defaults>
</compile_context>

<pallas_src>
import jax
import jax.numpy as jnp
from jax.experimental import pallas as pl
from jax.experimental.pallas import tpu as pltpu

# Below this size a single DMA is issued (chunking tiny copies only adds descriptor
# overhead); above it the copy is split into up to MAX_CHUNKS pieces along the leading
# dim so multiple DMA engines can overlap.
CHUNK_THRESHOLD_BYTES = 1 * 1024 * 1024
MAX_CHUNKS = 4


def _make_dma_copy_kernel(bounds):
    """Kernel factory: issue one HBM->HBM async copy per (static) chunk, then wait."""

    def kernel(x_ref, o_ref, sem):
        copies = []
        for i, (s, e) in enumerate(bounds):
            # Static slices of pl.ANY (HBM) refs are zero-cost views; the DMA streams
            # each contiguous leading-dim chunk straight HBM -> HBM (no VMEM staging).
            cp = pltpu.make_async_copy(x_ref.at[s:e], o_ref.at[s:e], sem.at[i])
            cp.start()
            copies.append(cp)
        for cp in copies:
            cp.wait()

    return kernel


def _identity_copy_dma(x):
    """Materialize an identity copy of `x` with a direct HBM->HBM DMA Pallas kernel."""
    orig_shape = x.shape
    if x.ndim == 0:
        x = jnp.reshape(x, (1,))  # give the DMA a 1-D view; reshape back afterwards

    lead = x.shape[0]
    itemsize = x.dtype.itemsize
    total_bytes = x.size * itemsize

    if total_bytes <= CHUNK_THRESHOLD_BYTES:
        nchunks = 1
    else:
        nchunks = int(min(MAX_CHUNKS, lead))

    # Static, even-ish chunk boundaries along the leading dim.
    base, rem = divmod(lead, nchunks)
    bounds = []
    start = 0
    for i in range(nchunks):
        end = start + base + (1 if i < rem else 0)
        bounds.append((start, end))
        start = end

    out = pl.pallas_call(
        _make_dma_copy_kernel(tuple(bounds)),
        out_shape=jax.ShapeDtypeStruct(x.shape, x.dtype),
        in_specs=[pl.BlockSpec(memory_space=pl.ANY)],   # raw HBM ref, no auto-DMA
        out_specs=pl.BlockSpec(memory_space=pl.ANY),    # raw HBM ref, no auto-DMA
        scratch_shapes=[pltpu.SemaphoreType.DMA((nchunks,))],
        cost_estimate=pl.CostEstimate(
            flops=0, transcendentals=0, bytes_accessed=2 * total_bytes),
    )(x)

    return jnp.reshape(out, orig_shape)


def squeeze_pallas(x, materialize_copy=True):
    """Equivalent of torch.Tensor.squeeze(): drop all size-1 dims.

    materialize_copy=False is the recommended production path: squeeze is metadata-only,
    so a plain reshape (zero HBM traffic) is returned.  With materialize_copy=True the
    result is produced by the Pallas HBM->HBM DMA identity-copy kernel.
    """
    out_shape = tuple(d for d in x.shape if d != 1)
    y = jnp.reshape(x, out_shape)  # metadata-only squeeze
    if not materialize_copy or y.size == 0:
        return y
    return _identity_copy_dma(y)


if __name__ == "__main__":
    key = jax.random.PRNGKey(0)

    # (2, 1, 16, 1, 16) --squeeze--> (2, 16, 16)
    x = jax.random.normal(key, (2, 1, 16, 1, 16), dtype=jnp.float32)
    ref = jnp.squeeze(x)

    out = jax.block_until_ready(squeeze_pallas(x))
    assert out.shape == ref.shape, (out.shape, ref.shape)
    assert out.dtype == ref.dtype, (out.dtype, ref.dtype)
    assert bool(jnp.array_equal(out, ref))

    # Ragged element count (15 elements, not a multiple of 128): no padding needed,
    # the HBM->HBM DMA copies arbitrary shapes as-is.
    x2 = jax.random.normal(jax.random.PRNGKey(0), (3, 1, 5, 1), dtype=jnp.float32)
    ref2 = jnp.squeeze(x2)
    out2 = jax.block_until_ready(squeeze_pallas(x2))
    assert out2.shape == ref2.shape and bool(jnp.array_equal(out2, ref2))

    # Zero-copy fast path (metadata-only), per the perf review's top recommendation.
    out3 = jax.block_until_ready(squeeze_pallas(x, materialize_copy=False))
    assert out3.shape == ref.shape and bool(jnp.array_equal(out3, ref))

    print("KERNEL_OK")
</pallas_src>

<mosaic_0001>
module attributes {stable_mosaic.version = 11 : i64} {
  func.func @kernel(%arg0: memref<2x16x16xf32, #tpu.memory_space<any>>, %arg1: memref<2x16x16xf32, #tpu.memory_space<any>>, %arg2: memref<1x!tpu.dma_semaphore, #tpu.memory_space<semaphore_mem>>) attributes {dimension_semantics = [], scalar_prefetch = 0 : i64, scratch_operands = 1 : i64, tpu.core_type = #tpu.core_type<tc>} {
    %c0_i32 = arith.constant 0 : i32
    %c0_i32_0 = arith.constant 0 : i32
    %c0_i32_1 = arith.constant 0 : i32
    %c0_i32_2 = arith.constant 0 : i32
    %0 = tpu.memref_slice %arg0[%c0_i32_0, %c0_i32_1, %c0_i32_2] : memref<2x16x16xf32, #tpu.memory_space<any>> -> memref<2x16x16xf32, #tpu.memory_space<any>>
    %c0_i32_3 = arith.constant 0 : i32
    %c0_i32_4 = arith.constant 0 : i32
    %c0_i32_5 = arith.constant 0 : i32
    %1 = tpu.memref_slice %arg1[%c0_i32_3, %c0_i32_4, %c0_i32_5] : memref<2x16x16xf32, #tpu.memory_space<any>> -> memref<2x16x16xf32, #tpu.memory_space<any>>
    %2 = tpu.memref_slice %arg2[%c0_i32] : memref<1x!tpu.dma_semaphore, #tpu.memory_space<semaphore_mem>> -> memref<1x!tpu.dma_semaphore, #tpu.memory_space<semaphore_mem>>
    %3 = tpu.memref_squeeze %2 : memref<1x!tpu.dma_semaphore, #tpu.memory_space<semaphore_mem>> -> memref<!tpu.dma_semaphore, #tpu.memory_space<semaphore_mem>>
    tpu.enqueue_dma source(%0 : memref<2x16x16xf32, #tpu.memory_space<any>>) target(%1 : memref<2x16x16xf32, #tpu.memory_space<any>>) target_semaphore(%3 : memref<!tpu.dma_semaphore, #tpu.memory_space<semaphore_mem>>)
    %c0_i32_6 = arith.constant 0 : i32
    %c0_i32_7 = arith.constant 0 : i32
    %c0_i32_8 = arith.constant 0 : i32
    %c0_i32_9 = arith.constant 0 : i32
    %4 = tpu.memref_slice %arg0[%c0_i32_7, %c0_i32_8, %c0_i32_9] : memref<2x16x16xf32, #tpu.memory_space<any>> -> memref<2x16x16xf32, #tpu.memory_space<any>>
    %c0_i32_10 = arith.constant 0 : i32
    %c0_i32_11 = arith.constant 0 : i32
    %c0_i32_12 = arith.constant 0 : i32
    %5 = tpu.memref_slice %arg1[%c0_i32_10, %c0_i32_11, %c0_i32_12] : memref<2x16x16xf32, #tpu.memory_space<any>> -> memref<2x16x16xf32, #tpu.memory_space<any>>
    %6 = tpu.memref_slice %arg2[%c0_i32_6] : memref<1x!tpu.dma_semaphore, #tpu.memory_space<semaphore_mem>> -> memref<1x!tpu.dma_semaphore, #tpu.memory_space<semaphore_mem>>
    %7 = tpu.memref_squeeze %6 : memref<1x!tpu.dma_semaphore, #tpu.memory_space<semaphore_mem>> -> memref<!tpu.dma_semaphore, #tpu.memory_space<semaphore_mem>>
    tpu.wait_dma2 semaphore(%7 : memref<!tpu.dma_semaphore, #tpu.memory_space<semaphore_mem>>) src(%4 : memref<2x16x16xf32, #tpu.memory_space<any>>) dst(%5 : memref<2x16x16xf32, #tpu.memory_space<any>>)
    return
  }
}

</mosaic_0001>

<bundles_post_ra>
// kernel: tpu_custom_call.1
= control target key start
LH: loop header
LB: loop body
LE: loop exit
PB: predicated region body
PF: predicated region fallthrough
CT: control target
= control target key end

     0   :  { %s29_s6 = smov [#allocation2]   ;;  %s30_s7 = smov 131072   ;;  %s48_s0 = inlined_call_operand.hbm [shape: f32[2,16,16], index: 0, kind: input, shape index: {}]   ;;  %s49_s1 = inlined_call_operand.hbm [shape: f32[2,16,16], index: 1, kind: output, shape index: {}]  }
   0x1   :  { %s31_s8 = smov 0  }
   0x2   :  { %12 = dma.general %s48_s0, 512, %s49_s1, %s29_s6, %s30_s7, [#allocation4], %s31_s8, 0  }
   0x3   :  { %27 = dma.done.wait [#allocation2], 512 }
   0x4   :  { %28 = vsyncadd [#allocation2], 4294966784 }
   0x5   :  { %17 = vsyncmov [#allocation2] }
   0x8   :  { %s18_s13 = vpop.sfrf %17 }
   0x9   :  { %p23_p0 = scmp.ne.s32.totalorder %s18_s13, 0 }
   0xb   :  { %22 = shalt.err (%p23_p0)  }

</bundles_post_ra>
